<compile_context>
chip_gen: v6e
topology: v6e:2x2x1
jax: 0.10.0
libtpu: 0.0.40
codegen_flags: <defaults>
</compile_context>

<pallas_src>
import functools

import jax
import jax.numpy as jnp
from jax import lax
from jax.experimental import pallas as pl
from jax.experimental.pallas import tpu as pltpu

_EPS = 1e-12


def _round_up(x, m):
    return ((x + m - 1) // m) * m


def _power_iter_kernel(w2d_ref, u_ref, v_ref, u_out_ref, v_out_ref, sig_ref,
                       *, power_iterations):
    """One-shot power iteration + sigma (runs ONCE, not per batch element).

    w2d_ref : (Cout, K)    u_ref : (1, Cout)    v_ref : (1, K)
    """
    w = w2d_ref[...]
    u = u_ref[...]
    v = v_ref[...]

    u_raw = None
    for _ in range(power_iterations):
        v_raw = jnp.dot(u, w, preferred_element_type=jnp.float32)        # u @ W2d -> (1, K)
        v = v_raw / (jnp.sqrt(jnp.sum(v_raw * v_raw, keepdims=True)) + _EPS)
        u_raw = lax.dot_general(v, w, (((1,), (1,)), ((), ())),
                                preferred_element_type=jnp.float32)      # (W2d v)^T -> (1, Cout)
        u = u_raw / (jnp.sqrt(jnp.sum(u_raw * u_raw, keepdims=True)) + _EPS)

    if u_raw is None:  # power_iterations == 0: sigma = u0 . (W2d v0)
        u_raw = lax.dot_general(v, w, (((1,), (1,)), ((), ())),
                                preferred_element_type=jnp.float32)

    u_out_ref[...] = u
    v_out_ref[...] = v
    sig_ref[...] = jnp.sum(u * u_raw, keepdims=True)                     # (1, 1)


def _conv_kernel(w_ref, b_ref, x_ref, y_ref, *, kh, kw, wp, acc_w, tb):
    """Batch-blocked conv with the sigma-scaled stacked weight.

    w_ref : (Cout, KH*KW*Cin)  -- W_bar = W/sigma, tap-major stacking
    b_ref : (Cout, 1)
    x_ref : (TB, Cin, in_w)    -- flattened zero-padded images
    y_ref : (TB, Cout, acc_w)  -- padded-pitch, lane-dense output
    """
    wk = w_ref[...]
    bias = b_ref[...]
    for bi in range(tb):                                # unrolled batch sub-block
        xb = x_ref[bi]                                  # (Cin, in_w)
        taps = []
        for ki in range(kh):
            for kj in range(kw):
                off = ki * wp + kj
                taps.append(xb[:, off:off + acc_w])     # static lane slice
        xk = jnp.concatenate(taps, axis=0)              # (KH*KW*Cin, acc_w) in VMEM
        y_ref[bi] = jnp.dot(wk, xk, preferred_element_type=jnp.float32) + bias


def _pick_batch_block(n, per_image_bytes, max_tb=8, budget_bytes=8 << 20):
    """Largest TB dividing N that keeps >=2 grid steps and blocks within budget."""
    cands = [tb for tb in range(1, min(max_tb, n) + 1)
             if n % tb == 0 and tb * per_image_bytes <= budget_bytes]
    if not cands:
        cands = [1]
    two_step = [tb for tb in cands if n // tb >= 2]   # balance v7x's two TensorCores
    return max(two_step) if two_step else max(cands)


def spectral_norm_conv2d_forward(x, w, b, u, v, *, power_iterations=1):
    """SpectralNorm(Conv2d(stride=1, padding=1)).forward().

    x: (N, Cin, H, W)   w: (Cout, Cin, KH, KW)   b: (Cout,)
    u: (Cout,)          v: (Cin*KH*KW,)
    Returns (y, u_new, v_new, sigma).
    """
    f32 = jnp.float32
    N, Cin, H, W = x.shape
    Cout, _, KH, KW = w.shape
    height, width = Cout, Cin * KH * KW

    pad_h, pad_w = (KH - 1) // 2, (KW - 1) // 2
    Hp, Wp = H + 2 * pad_h, W + 2 * pad_w

    # lane-friendly sizes: accumulator width and flat input width are mults of 128
    acc_w = _round_up(Hp * Wp, 128)
    max_off = (KH - 1) * Wp + (KW - 1)
    in_w = _round_up(max_off + acc_w, 128)

    # --- stage 1: power iteration + sigma (one tiny kernel, hoisted out of the grid) ---
    w2d = w.reshape(height, width).astype(f32)
    u2 = u.reshape(1, height).astype(f32)
    v2 = v.reshape(1, width).astype(f32)

    u_out, v_out, sig_out = pl.pallas_call(
        functools.partial(_power_iter_kernel, power_iterations=power_iterations),
        out_shape=(jax.ShapeDtypeStruct((1, height), f32),
                   jax.ShapeDtypeStruct((1, width), f32),
                   jax.ShapeDtypeStruct((1, 1), f32)),
    )(w2d, u2, v2)
    sigma = sig_out[0, 0]

    # --- stage 2: conv(x, W/sigma) + b, batch-blocked ---
    # tiny host-side weight prep: W_bar stacked tap-major -> (Cout, KH*KW*Cin)
    w_stk = (w.astype(f32) / sigma).transpose(0, 2, 3, 1).reshape(Cout, KH * KW * Cin)
    b2 = b.reshape(Cout, 1).astype(f32)

    # pad + flatten activations (single cheap XLA pad, no transposes)
    x_pad = jnp.pad(x.astype(f32), ((0, 0), (0, 0), (pad_h, pad_h), (pad_w, pad_w)))
    x_flat = x_pad.reshape(N, Cin, Hp * Wp)
    x_flat = jnp.pad(x_flat, ((0, 0), (0, 0), (0, in_w - Hp * Wp)))

    per_image_bytes = 4 * (Cin * in_w + Cout * acc_w)
    TB = _pick_batch_block(N, per_image_bytes)

    kernel = functools.partial(_conv_kernel, kh=KH, kw=KW, wp=Wp, acc_w=acc_w, tb=TB)

    y_acc = pl.pallas_call(
        kernel,
        grid=(N // TB,),
        in_specs=[
            pl.BlockSpec((Cout, KH * KW * Cin), lambda i: (0, 0)),   # stacked W/sigma
            pl.BlockSpec((Cout, 1), lambda i: (0, 0)),               # bias
            pl.BlockSpec((TB, Cin, in_w), lambda i: (i, 0, 0)),      # x batch block
        ],
        out_specs=pl.BlockSpec((TB, Cout, acc_w), lambda i: (i, 0, 0)),
        out_shape=jax.ShapeDtypeStruct((N, Cout, acc_w), f32),
        compiler_params=pltpu.CompilerParams(
            dimension_semantics=("parallel",),
            vmem_limit_bytes=32 * 1024 * 1024,   # explicit; TB picker keeps blocks far below this
        ),
    )(w_stk, b2, x_flat)

    # drop the pitch columns / garbage tail (small XLA slice)
    # TODO(synk): a fused consumer could read the lane-dense pitched layout directly
    # and skip this extra HBM round trip of the output.
    y = y_acc[:, :, :H * Wp].reshape(N, Cout, H, Wp)[:, :, :, :W]
    return y, u_out[0], v_out[0], sigma


if __name__ == "__main__":
    key = jax.random.PRNGKey(0)
    k_x, k_w, k_b, k_u, k_v = jax.random.split(key, 5)

    N, Cin, H, W = 2, 4, 16, 16
    Cout, KH, KW = 8, 3, 3

    x = jax.random.normal(k_x, (N, Cin, H, W), jnp.float32)
    w = jax.random.normal(k_w, (Cout, Cin, KH, KW), jnp.float32) * 0.1
    b = jax.random.normal(k_b, (Cout,), jnp.float32) * 0.1
    # _make_params: u, v ~ N(0, 1) then l2-normalized.
    u0 = jax.random.normal(k_u, (Cout,), jnp.float32)
    v0 = jax.random.normal(k_v, (Cin * KH * KW,), jnp.float32)
    u0 = u0 / (jnp.linalg.norm(u0) + _EPS)
    v0 = v0 / (jnp.linalg.norm(v0) + _EPS)

    y, u_new, v_new, sigma = spectral_norm_conv2d_forward(
        x, w, b, u0, v0, power_iterations=1)
    jax.block_until_ready(y)

    # --- pure-JAX reference of the exact PyTorch semantics ---
    w2d = w.reshape(Cout, -1)
    v_r = w2d.T @ u0
    v_r = v_r / (jnp.linalg.norm(v_r) + _EPS)
    u_r = w2d @ v_r
    u_r = u_r / (jnp.linalg.norm(u_r) + _EPS)
    sigma_r = u_r @ (w2d @ v_r)
    w_bar = w / sigma_r
    y_ref = jax.lax.conv_general_dilated(
        x, w_bar, window_strides=(1, 1), padding=((1, 1), (1, 1)),
        dimension_numbers=("NCHW", "OIHW", "NCHW"),
    ) + b[None, :, None, None]

    assert jnp.allclose(sigma, sigma_r, rtol=1e-4, atol=1e-5), "sigma mismatch"
    assert jnp.allclose(u_new, u_r, rtol=1e-4, atol=1e-5), "u mismatch"
    assert jnp.allclose(v_new, v_r, rtol=1e-4, atol=1e-5), "v mismatch"
    assert jnp.allclose(y, y_ref, rtol=1e-4, atol=1e-4), "output mismatch"

    print("KERNEL_OK")
</pallas_src>

<mosaic_0001>
module attributes {stable_mosaic.version = 11 : i64} {
  func.func @_power_iter_kernel(%arg0: memref<8x36xf32, #tpu.memory_space<vmem>>, %arg1: memref<1x8xf32, #tpu.memory_space<vmem>>, %arg2: memref<1x36xf32, #tpu.memory_space<vmem>>, %arg3: memref<1x8xf32, #tpu.memory_space<vmem>>, %arg4: memref<1x36xf32, #tpu.memory_space<vmem>>, %arg5: memref<1x1xf32, #tpu.memory_space<vmem>>) attributes {dimension_semantics = [], scalar_prefetch = 0 : i64, scratch_operands = 0 : i64, tpu.core_type = #tpu.core_type<tc>} {
    %c0 = arith.constant 0 : index
    %c0_0 = arith.constant 0 : index
    %0 = vector.load %arg0[%c0, %c0_0] : memref<8x36xf32, #tpu.memory_space<vmem>>, vector<8x36xf32>
    %c0_1 = arith.constant 0 : index
    %c0_2 = arith.constant 0 : index
    %1 = vector.load %arg1[%c0_1, %c0_2] : memref<1x8xf32, #tpu.memory_space<vmem>>, vector<1x8xf32>
    %cst = arith.constant dense<0.000000e+00> : vector<1x36xf32>
    %2 = tpu.matmul %1, %0, %cst {dimension_numbers = #tpu.dot_dimension_numbers<[1], [0], [0], [1], [0, 0, 1, 1], [], []>} : vector<1x8xf32>, vector<8x36xf32>, vector<1x36xf32> -> vector<1x36xf32>
    %3 = arith.mulf %2, %2 : vector<1x36xf32>
    %4 = vector.shape_cast %3 : vector<1x36xf32> to vector<1x1x36xf32>
    %cst_3 = arith.constant dense<0.000000e+00> : vector<1xf32>
    %5 = vector.multi_reduction <add>, %4, %cst_3 [1, 2] : vector<1x1x36xf32> to vector<1xf32>
    %6 = vector.shape_cast %5 : vector<1xf32> to vector<1x1x1xf32>
    %7 = vector.extract %6[0, 0, 0] : f32 from vector<1x1x1xf32>
    %8 = vector.broadcast %7 : f32 to vector<1x1xf32>
    %9 = math.sqrt %8 : vector<1x1xf32>
    %cst_4 = arith.constant 9.99999996E-13 : f32
    %10 = vector.broadcast %cst_4 : f32 to vector<1x1xf32>
    %11 = arith.addf %9, %10 : vector<1x1xf32>
    %12 = vector.broadcast %11 : vector<1x1xf32> to vector<1x36xf32>
    %13 = arith.divf %2, %12 : vector<1x36xf32>
    %cst_5 = arith.constant dense<0.000000e+00> : vector<1x8xf32>
    %14 = tpu.matmul %13, %0, %cst_5 {dimension_numbers = #tpu.dot_dimension_numbers<[1], [1], [0], [0], [0, 0, 1, 0], [], []>} : vector<1x36xf32>, vector<8x36xf32>, vector<1x8xf32> -> vector<1x8xf32>
    %15 = arith.mulf %14, %14 : vector<1x8xf32>
    %16 = vector.shape_cast %15 : vector<1x8xf32> to vector<1x1x8xf32>
    %cst_6 = arith.constant dense<0.000000e+00> : vector<1xf32>
    %17 = vector.multi_reduction <add>, %16, %cst_6 [1, 2] : vector<1x1x8xf32> to vector<1xf32>
    %18 = vector.shape_cast %17 : vector<1xf32> to vector<1x1x1xf32>
    %19 = vector.extract %18[0, 0, 0] : f32 from vector<1x1x1xf32>
    %20 = vector.broadcast %19 : f32 to vector<1x1xf32>
    %21 = math.sqrt %20 : vector<1x1xf32>
    %cst_7 = arith.constant 9.99999996E-13 : f32
    %22 = vector.broadcast %cst_7 : f32 to vector<1x1xf32>
    %23 = arith.addf %21, %22 : vector<1x1xf32>
    %24 = vector.broadcast %23 : vector<1x1xf32> to vector<1x8xf32>
    %25 = arith.divf %14, %24 : vector<1x8xf32>
    %c0_8 = arith.constant 0 : index
    %c0_9 = arith.constant 0 : index
    %26 = vector.load %arg3[%c0_8, %c0_9] : memref<1x8xf32, #tpu.memory_space<vmem>>, vector<1x8xf32>
    tpu.vector_store %arg3[%c0_8, %c0_9], %25 {strides = array<i32>} : memref<1x8xf32, #tpu.memory_space<vmem>>, vector<1x8xf32>,
    %c0_10 = arith.constant 0 : index
    %c0_11 = arith.constant 0 : index
    %27 = vector.load %arg4[%c0_10, %c0_11] : memref<1x36xf32, #tpu.memory_space<vmem>>, vector<1x36xf32>
    tpu.vector_store %arg4[%c0_10, %c0_11], %13 {strides = array<i32>} : memref<1x36xf32, #tpu.memory_space<vmem>>, vector<1x36xf32>,
    %28 = arith.mulf %25, %14 : vector<1x8xf32>
    %29 = vector.shape_cast %28 : vector<1x8xf32> to vector<1x1x8xf32>
    %cst_12 = arith.constant dense<0.000000e+00> : vector<1xf32>
    %30 = vector.multi_reduction <add>, %29, %cst_12 [1, 2] : vector<1x1x8xf32> to vector<1xf32>
    %31 = vector.shape_cast %30 : vector<1xf32> to vector<1x1x1xf32>
    %32 = vector.extract %31[0, 0, 0] : f32 from vector<1x1x1xf32>
    %33 = vector.broadcast %32 : f32 to vector<1x1xf32>
    %c0_13 = arith.constant 0 : index
    %c0_14 = arith.constant 0 : index
    %34 = vector.load %arg5[%c0_13, %c0_14] : memref<1x1xf32, #tpu.memory_space<vmem>>, vector<1x1xf32>
    tpu.vector_store %arg5[%c0_13, %c0_14], %33 {strides = array<i32>} : memref<1x1xf32, #tpu.memory_space<vmem>>, vector<1x1xf32>,
    return
  }
}

</mosaic_0001>

<bundles_post_ra>
// kernel: tpu_custom_call.1
= control target key start
LH: loop header
LB: loop body
LE: loop exit
PB: predicated region body
PF: predicated region fallthrough
CT: control target
= control target key end

     0   :  { %11 = vsyncpa [#allocation3], 0  ;;  %s469_s0 = inlined_call_operand.hbm [shape: f32[8,36], index: 0, kind: input, shape index: {}]   ;;  %s470_s1 = inlined_call_operand.vmem [shape: f32[1,8], index: 1, kind: input, shape index: {}]   ;;  %s471_s2 = inlined_call_operand.vmem [shape: f32[1,36], index: 2, kind: input, shape index: {}]   ;;  %s472_s3 = inlined_call_operand.hbm [shape: f32[1,8], index: 3, kind: output, shape index: {0}]   ;;  %s473_s4 = inlined_call_operand.hbm [shape: f32[1,36], index: 4, kind: output, shape index: {1}]   ;;  %s474_s5 = inlined_call_operand.hbm [shape: f32[1,1], index: 5, kind: output, shape index: {2}]  }
   0x1   :  { %12 = vsyncpa [#allocation4], 0 }
   0x2   :  { %13 = vsyncpa [#allocation7], 0  ;;  %s411_s18 = smov [#allocation2]  }
   0x3   :  { %s20_s19 = sshll.u32 %s411_s18, 4  ;;  %s21_s19 = int_to_ptr.vmem [resolvable:$true] %s20_s19 }
   0x4   :  { %s333_s20 = scalar_lea.vmem %s21_s19, 128  ;;  %p338_p1 = scmp.lt.s32.totalorder %s21_s19, %s21_s19 }
   0x5   :  { %p334_p0 = scmp.ne.s32.totalorder %s21_s19, %s333_s20  ;;  %p339_p2 = scmp.lt.s32.totalorder %s333_s20, %s333_s20 }
   0x7   :  { %p340_p3 = por %p339_p2, %p338_p1 }
   0x9   :  { %p341_p4 = pnand %p340_p3, %p334_p0 }
   0xb   :  { %344 = shalt.err (!%p341_p4)
}
   0xc   :  { %23 = dma.hbm_to_vmem [thread:$0]  %s469_s0, 128, %s21_s19, [#allocation3]  }
   0xd   :  { %405 = dma.done.wait [#allocation3], 128  }
   0xe   :  { %406 = vsyncadd [#allocation3], 4294967168  ;;  %v412_v0 = vmov 0.0   ;;  %vm413_vm0 = vmmov 0   ;;  %vm33_vm1 = vcmask 64512   ;;  %v31_v1 = vld [vmem:[#allocation2] sm:$0xff] }
   0xf   :  { %295 = vmatprep.subr.mxu0 %v412_v0  ;;  %297 = vmatprep.mubr.msk.f32.mxu0 %vm413_vm0, %v412_v0  ;;  %v32_v2 = vld [vmem:[%s470_s1] sm:$0x1]  ;;  %vm108_vm2 = vcmask 286720   ;;  %vm130_vm3 = vcmask 293888   ;;  %vm208_vm6 = vcmask 57344   ;;  %s414_s24 = smov [#allocation6]  }
  0x10   :  { %300 = vmatprep.subr.mxu1 %v412_v0  ;;  %302 = vmatprep.mubr.msk.f32.mxu1 %vm413_vm0, %v412_v0  ;;  %s262_s25 = sshll.u32 %s414_s24, 4  ;;  %s415_s26 = smov [#allocation5]   ;;  %s263_s25 = int_to_ptr.vmem [resolvable:$true] %s262_s25 }
  0x11   :  { %296 = vmatpush3.msra.mxu0 %v31_v1  ;;  %301 = vmatpush3.xpose.msk.msra.mxu1 %vm130_vm3, %v31_v1  ;;  %s252_s27 = sshll.u32 %s415_s26, 4  ;;  %s345_s28 = scalar_lea.vmem %s263_s25, 16  ;;  %s253_s27 = int_to_ptr.vmem [resolvable:$true] %s252_s27 }
  0x12   :  { %298 = vmatmul.mubr.msk.f32.vlgmr.msra.gmra.mxu0 %vm33_vm1, %v32_v2  ;;  %p346_p5 = scmp.ne.s32.totalorder %s263_s25, %s345_s28  ;;  %s349_s29 = scalar_lea.vmem %s263_s25, 32 }
  0x13   :  { %p350_p6 = scmp.lt.s32.totalorder %s263_s25, %s263_s25  ;;  %p351_p7 = scmp.lt.s32.totalorder %s349_s29, %s345_s28 }
  0x15   :  { %p352_p8 = por %p351_p7, %p350_p6 }
  0x17   :  { %p353_p9 = pnand %p352_p8, %p346_p5 }
  0xd2   :  { %v103_v3 = vpop.f32.mrf.mxu0 }
  0xd3   :  { %v107_v4 = vmul.f32 %v103_v3, %v103_v3 }
  0xd4   :  { %v299_v5 = vpop.f32.mrf.mxu0 }
  0xd5   :  { %v109_v6 = vsel %vm108_vm2, %v107_v4, 0.0 }
  0xd6   :  { %110 = vadd.xlane.f32.xlu0 %v109_v6 }
 0x15f   :  { %v111_v7 = vpop.xlane.xlu0 %110 }
 0x160   :  { %v112_v8 = vrot.slane %v111_v7, 4 }
 0x162   :  { %v113_v9 = vadd.f32 %v112_v8, %v111_v7 }
 0x164   :  { %v114_v10 = vrot.slane %v113_v9, 2 }
 0x166   :  { %v115_v11 = vadd.f32 %v114_v10, %v113_v9 }
 0x168   :  { %v116_v12 = vrot.slane %v115_v11, 1 }
 0x16a   :  { %v117_v13 = vadd.f32 %v116_v12, %v115_v11 }
 0x16c   :  { %305 = vpush %v117_v13 }
 0x19d   :  { %s306_s0 = spop %305 }
 0x19e   :  { %v119_v14 = vstv %s306_s0 }
 0x19f   :  { %317 = vrsqrt.f32 %v119_v14  ;;  %vm122_vm4 = vcmp.eq.f32.partialorder %v119_v14, inf  ;;  %v125_v17 = vand.u32 2147483648, %v119_v14  ;;  %vm124_vm5 = vcmp.eq.f32.partialorder %v119_v14, 0.0 }
 0x1ac   :  { %v318_v15 = vpop.eup %317 }
 0x1ad   :  { %v121_v16 = vmul.f32 %v318_v15, %v119_v14 }
 0x1af   :  { %v123_v18 = vsel %vm122_vm4, %v119_v14, %v121_v16 }
 0x1b0   :  { %v126_v19 = vsel %vm124_vm5, %v125_v17, %v123_v18 }
 0x1b1   :  { %v127_v20 = vadd.f32 1e-12, %v126_v19 }
 0x1b3   :  { %319 = vrcp.f32 %v127_v20 }
 0x1c0   :  { %v320_v21 = vpop.eup %319 }
 0x1c1   :  { %v129_v22 = vmul.f32 %v320_v21, %v103_v3 }
 0x1c3   :  { %303 = vmatmul.mubr.msk.f32.vlgmr.msra.gmra.mxu1 %vm130_vm3, %v129_v22  ;;  %231 = vst.msk [vmem:[#allocation6] sm:$0x1] %vm108_vm2, %v129_v22 }
 0x283   :  { %v203_v23 = vpop.f32.mrf.mxu1 }
 0x284   :  { %v207_v24 = vmul.f32 %v203_v23, %v203_v23 }
 0x285   :  { %v304_v25 = vpop.f32.mrf.mxu1 }
 0x286   :  { %v209_v26 = vsel %vm208_vm6, %v207_v24, 0.0 }
 0x287   :  { %210 = vadd.xlane.f32.xlu0 %v209_v26 }
 0x310   :  { %v211_v27 = vpop.xlane.xlu0 %210 }
 0x311   :  { %v212_v28 = vrot.slane %v211_v27, 4 }
 0x313   :  { %v213_v29 = vadd.f32 %v212_v28, %v211_v27 }
 0x315   :  { %v214_v30 = vrot.slane %v213_v29, 2 }
 0x317   :  { %v215_v31 = vadd.f32 %v214_v30, %v213_v29 }
 0x319   :  { %v216_v32 = vrot.slane %v215_v31, 1 }
 0x31b   :  { %v217_v33 = vadd.f32 %v216_v32, %v215_v31 }
 0x31d   :  { %307 = vpush %v217_v33 }
 0x34e   :  { %s308_s1 = spop %307 }
 0x34f   :  { %v219_v34 = vstv %s308_s1 }
 0x350   :  { %321 = vrsqrt.f32 %v219_v34  ;;  %vm222_vm7 = vcmp.eq.f32.partialorder %v219_v34, inf  ;;  %v225_v37 = vand.u32 2147483648, %v219_v34  ;;  %vm224_vm8 = vcmp.eq.f32.partialorder %v219_v34, 0.0 }
 0x35d   :  { %v322_v35 = vpop.eup %321 }
 0x35e   :  { %v221_v36 = vmul.f32 %v322_v35, %v219_v34 }
 0x360   :  { %v223_v38 = vsel %vm222_vm7, %v219_v34, %v221_v36 }
 0x361   :  { %v226_v39 = vsel %vm224_vm8, %v225_v37, %v223_v38 }
 0x362   :  { %v227_v40 = vadd.f32 1e-12, %v226_v39 }
 0x364   :  { %323 = vrcp.f32 %v227_v40 }
 0x371   :  { %v324_v41 = vpop.eup %323 }
 0x372   :  { %v229_v42 = vmul.f32 %v324_v41, %v203_v23 }
 0x374   :  { %v232_v43 = vmul.f32 %v229_v42, %v203_v23  ;;  %230 = vst.msk [vmem:[#allocation5] sm:$0x1] %vm208_vm6, %v229_v42 }
 0x376   :  { %v233_v44 = vsel %vm208_vm6, %v232_v43, 0.0 }
 0x377   :  { %234 = vadd.xlane.f32.xlu1 %v233_v44 }
 0x378   :  { %356 = shalt.err (!%p353_p9)
}
 0x379   :  { %265 = dma.vmem_to_hbm [thread:$0]  %s263_s25, 16, %s473_s4, [#allocation7]  }
 0x37a   :  { %s365_s7 = scalar_lea.vmem %s253_s27, 16  ;;  %s369_s8 = scalar_lea.vmem %s253_s27, 32 }
 0x37b   :  { %p366_p10 = scmp.ne.s32.totalorder %s253_s27, %s365_s7  ;;  %p370_p11 = scmp.lt.s32.totalorder %s253_s27, %s253_s27 }
 0x37c   :  { %p371_p12 = scmp.lt.s32.totalorder %s369_s8, %s365_s7 }
 0x37e   :  { %p372_p13 = por %p371_p12, %p370_p11 }
 0x380   :  { %p373_p0 = pnand %p372_p13, %p366_p10 }
 0x382   :  { %376 = shalt.err (!%p373_p0)
}
 0x383   :  { %255 = dma.vmem_to_hbm [thread:$0]  %s253_s27, 16, %s472_s3, [#allocation4]   ;;  %vm244_vm9 = vcmask 0  }
 0x384   :  { %s416_s4 = smov [#allocation8]  }
 0x385   :  { %s272_s11 = sshll.u32 %s416_s4, 4  ;;  %s273_s11 = int_to_ptr.vmem [resolvable:$true] %s272_s11 }
 0x386   :  { %s385_s13 = scalar_lea.vmem %s273_s11, 16  ;;  %s389_s14 = scalar_lea.vmem %s273_s11, 32 }
 0x387   :  { %p386_p1 = scmp.ne.s32.totalorder %s273_s11, %s385_s13  ;;  %p390_p2 = scmp.lt.s32.totalorder %s273_s11, %s273_s11 }
 0x388   :  { %p391_p3 = scmp.lt.s32.totalorder %s389_s14, %s385_s13 }
 0x38a   :  { %p392_p4 = por %p391_p3, %p390_p2 }
 0x38c   :  { %p393_p5 = pnand %p392_p4, %p386_p1 }
 0x400   :  { %v235_v45 = vpop.xlane.xlu1 %234 }
 0x401   :  { %v236_v46 = vrot.slane %v235_v45, 4 }
 0x403   :  { %v237_v47 = vadd.f32 %v236_v46, %v235_v45 }
 0x405   :  { %v238_v48 = vrot.slane %v237_v47, 2 }
 0x407   :  { %v239_v49 = vadd.f32 %v238_v48, %v237_v47 }
 0x409   :  { %v240_v50 = vrot.slane %v239_v49, 1 }
 0x40b   :  { %v241_v51 = vadd.f32 %v240_v50, %v239_v49 }
 0x40d   :  { %309 = vpush %v241_v51 }
 0x43e   :  { %s310_s12 = spop %309 }
 0x43f   :  { %v243_v52 = vstv %s310_s12 }
 0x440   :  { %245 = vst.msk [vmem:[#allocation8] sm:$0x1] %vm244_vm9, %v243_v52 }
 0x441   :  { %396 = shalt.err (!%p393_p5)
}
 0x442   :  { %275 = dma.vmem_to_hbm [thread:$0]  %s273_s11, 16, %s474_s5, [#allocation7]  }
 0x443   :  { %407 = dma.done.wait [#allocation4], 16  }
 0x444   :  { %408 = vsyncadd [#allocation4], 4294967280 }
 0x445   :  { %409 = dma.done.wait [#allocation7], 32  }
 0x446   :  { %410 = vsyncadd [#allocation7], 4294967264 }
 0x447   :  { %285 = vsyncpa [#allocation3], 1 }
 0x448   :  { %286 = vsyncpa [#allocation4], 1 }
 0x449   :  { %287 = vsyncpa [#allocation7], 1 }

</bundles_post_ra>
